<compile_context>
chip_gen: v7x
topology: tpu7x:2x2x1
jax: 0.10.0
libtpu: 0.0.40
codegen_flags: <defaults>
</compile_context>

<pallas_src>
import functools

import jax
import jax.numpy as jnp
from jax.experimental import pallas as pl
from jax.experimental.pallas import tpu as pltpu


_TARGET_STEP_BYTES = 2 << 20      # aim to stream ~2 MiB of logits per grid step
_MAX_ROW_TILE = 8192
_VMEM_BUDGET_FRACTION = 0.4       # working-set fraction of physical VMEM


# ---------------------------------------------------------------------------
# Tile sizing / hardware helpers
# ---------------------------------------------------------------------------
def _round_up(x, m):
    return ((x + m - 1) // m) * m


def _vmem_capacity_bytes():
    try:
        info = pltpu.get_tpu_info()
        cap = int(getattr(info, "vmem_capacity_bytes", 0) or 0)
        if cap > 0:
            return cap
    except Exception:
        pass
    return 64 << 20               # conservative (v7x per-TC sized) fallback


def _num_tensorcores():
    """Shards for the reduction: 2 only on multi-TensorCore devices."""
    try:
        info = pltpu.get_tpu_info()
        for name in ("num_cores", "num_tensorcores", "core_count", "cores_per_chip"):
            v = getattr(info, name, None)
            if isinstance(v, int) and v > 0:
                return min(v, 2)
    except Exception:
        pass
    try:
        kind = jax.devices()[0].device_kind.lower()
    except Exception:
        return 1
    if "lite" in kind or "v5e" in kind or "v6e" in kind or "v6 lite" in kind:
        return 1                  # v5e / v6e: single TensorCore per device
    if "v4" in kind or "v5p" in kind or "v5 " in kind or "7" in kind:
        return 2                  # v4/v5p megacore, v7x: two TensorCores
    return 1


def _per_row_vmem_bytes(c_pad, itemsize):
    # Per tile row, everything lane-padded to multiples of 128:
    #   2x double-buffered logits input block (input dtype)
    #   ~3 live fp32 (rt, c_pad) plane temporaries (one-hot / exp / masked exp)
    #   2x double-buffered lane-padded (rt, 1) int32 targets block
    #   ~2 lane-padded (rt, 1) fp32 column temporaries that may spill
    return 2 * c_pad * itemsize + 3 * c_pad * 4 + 2 * 128 * 4 + 2 * 128 * 4


def _pick_row_tile(n_rows, n_classes, itemsize, vmem_cap):
    c_pad = _round_up(n_classes, 128)
    want = max(_TARGET_STEP_BYTES // max(n_classes * itemsize, 1), 128)
    fit = int(vmem_cap * _VMEM_BUDGET_FRACTION) // _per_row_vmem_bytes(c_pad, itemsize)
    rt = min(int(want), int(fit), _MAX_ROW_TILE, _round_up(n_rows, 128))
    rt = max(128, rt - rt % 128)  # multiple of 128: sublane-safe for any dtype
    return int(rt)


def _vmem_limit_bytes(row_tile, n_classes, itemsize, vmem_cap):
    c_pad = _round_up(n_classes, 128)
    need = row_tile * _per_row_vmem_bytes(c_pad, itemsize) + (16 << 20)
    return int(max(48 << 20, min(need, int(vmem_cap * 0.9))))


# ---------------------------------------------------------------------------
# In-kernel math
# ---------------------------------------------------------------------------
def _dsc_loss_row(logits, tgt_col, alpha, smooth):
    """Per-row self-adjusting Dice loss, returned lane-dense.

    logits: (rt, C) float, tgt_col: (rt, 1) int32  ->  loss: (1, rt) float32
    """
    rt, n_classes = logits.shape
    x = logits.astype(jnp.float32)

    # ---- (rt, C) plane work: stable softmax + one-hot gather of target prob
    class_idx = jax.lax.broadcasted_iota(jnp.int32, (rt, n_classes), 1)
    onehot = class_idx == tgt_col                                  # (rt, C)
    m = jnp.max(x, axis=-1, keepdims=True)                         # (rt, 1)
    e = jnp.exp(x - m)                                             # (rt, C)
    denom = jnp.sum(e, axis=-1, keepdims=True)                     # (rt, 1)
    e_tgt = jnp.sum(jnp.where(onehot, e, 0.0), axis=-1, keepdims=True)

    # approx reciprocal rides the EUP slot instead of a VALU divide
    p_col = e_tgt * pl.reciprocal(denom, approx=True)              # (rt, 1)

    # ---- sublane -> lane relayout: the remaining per-row math is lane-dense
    p = p_col.reshape(1, rt)                                       # (1, rt)

    if alpha == 1.0:
        pf = (1.0 - p) * p
    elif alpha == 2.0:
        pf = (1.0 - p) * (1.0 - p) * p
    else:
        pf = jnp.power(1.0 - p, alpha) * p
    # the final ratio is on a (1, rt) vector -> an exact divide is ~free
    return 1.0 - (2.0 * pf + smooth) / (pf + 1.0 + smooth)


# ---------------------------------------------------------------------------
# Kernels
# ---------------------------------------------------------------------------
def _dsc_reduce_kernel(logits_ref, targets_ref, out_ref, *,
                       alpha, smooth, n_valid, row_tile, tiles_per_shard):
    s = pl.program_id(0)          # shard  ("parallel": one per TensorCore)
    i = pl.program_id(1)          # tile   ("arbitrary": reduction axis)

    @pl.when(i == 0)
    def _init():
        out_ref[...] = jnp.zeros_like(out_ref)

    row0 = (s * tiles_per_shard + i) * row_tile   # un-clamped logical offset

    # Fully-phantom tiles (only possible for the last shard) are skipped: no
    # softmax, no accumulation.
    @pl.when(row0 < n_valid)
    def _compute():
        loss = _dsc_loss_row(logits_ref[...], targets_ref[...], alpha, smooth)

        @pl.when(row0 + row_tile <= n_valid)      # common, fully-valid tile
        def _full():
            out_ref[...] += loss[None]

        @pl.when(row0 + row_tile > n_valid)       # ragged last tile
        def _ragged():
            col = jax.lax.broadcasted_iota(jnp.int32, (1, row_tile), 1)
            # Out-of-range rows hold garbage logits; the select picks 0.0 for
            # them, so nothing (not even a NaN) leaks into the accumulator.
            out_ref[...] += jnp.where(row0 + col < n_valid, loss, 0.0)[None]


def _dsc_none_kernel(logits_ref, targets_ref, out_ref, *, alpha, smooth):
    loss = _dsc_loss_row(logits_ref[...], targets_ref[...], alpha, smooth)
    out_ref[...] = loss[None]     # (1, 1, row_tile): lane-dense, unmasked store


# ---------------------------------------------------------------------------
# Wrappers
# ---------------------------------------------------------------------------
def _multi_dsc_reduce(logits, targets2d, alpha, smooth, reduction,
                      row_tile, num_shards, vlim):
    n_rows, n_classes = logits.shape
    num_tiles = -(-n_rows // row_tile)
    num_shards = max(1, min(num_shards, num_tiles))
    tiles_per_shard = -(-num_tiles // num_shards)

    def in_map(s, i):
        # clamp so phantom tiles of the last shard never DMA out of bounds
        return (jnp.minimum(s * tiles_per_shard + i, num_tiles - 1), 0)

    kernel = functools.partial(
        _dsc_reduce_kernel, alpha=alpha, smooth=smooth, n_valid=n_rows,
        row_tile=row_tile, tiles_per_shard=tiles_per_shard)

    partials = pl.pallas_call(
        kernel,
        out_shape=jax.ShapeDtypeStruct((num_shards, 1, row_tile), jnp.float32),
        grid_spec=pltpu.PrefetchScalarGridSpec(
            num_scalar_prefetch=0,
            grid=(num_shards, tiles_per_shard),
            in_specs=[pl.BlockSpec((row_tile, n_classes), in_map),
                      pl.BlockSpec((row_tile, 1), in_map)],
            out_specs=pl.BlockSpec((1, 1, row_tile), lambda s, i: (s, 0, 0)),
        ),
        compiler_params=pltpu.CompilerParams(
            dimension_semantics=("parallel", "arbitrary"),
            vmem_limit_bytes=vlim),
    )(logits, targets2d)

    total = jnp.sum(partials)     # single tiny reduction in the wrapper
    if reduction == "mean":
        return total / n_rows
    return total


def _multi_dsc_none(logits, targets2d, alpha, smooth, row_tile, vlim):
    n_rows, n_classes = logits.shape
    num_tiles = -(-n_rows // row_tile)
    kernel = functools.partial(_dsc_none_kernel, alpha=alpha, smooth=smooth)
    out = pl.pallas_call(
        kernel,
        out_shape=jax.ShapeDtypeStruct((num_tiles, 1, row_tile), jnp.float32),
        grid_spec=pltpu.PrefetchScalarGridSpec(
            num_scalar_prefetch=0,
            grid=(num_tiles,),
            in_specs=[pl.BlockSpec((row_tile, n_classes), lambda i: (i, 0)),
                      pl.BlockSpec((row_tile, 1), lambda i: (i, 0))],
            out_specs=pl.BlockSpec((1, 1, row_tile), lambda i: (i, 0, 0)),
        ),
        compiler_params=pltpu.CompilerParams(
            dimension_semantics=("parallel",),
            vmem_limit_bytes=vlim),
    )(logits, targets2d)
    # drop the padding rows of the last tile; match torch's (N, 1) output
    return out.reshape(num_tiles * row_tile, 1)[:n_rows]


def multi_dsc_loss(logits, targets, alpha=1.0, smooth=1.0, reduction="mean",
                   row_tile=None, num_shards=None):
    """JAX/Pallas equivalent of MultiDSCLoss.forward.

    logits:  (N, C) float
    targets: (N,)   int, values in [0, C - 1]
    """
    n_rows, n_classes = logits.shape
    itemsize = jnp.dtype(logits.dtype).itemsize
    vmem_cap = _vmem_capacity_bytes()
    if row_tile is None:
        row_tile = _pick_row_tile(n_rows, n_classes, itemsize, vmem_cap)
    else:
        row_tile = max(128, _round_up(int(row_tile), 128))
        row_tile = min(row_tile, _round_up(n_rows, 128))
    if num_shards is None:
        num_shards = _num_tensorcores()
    vlim = _vmem_limit_bytes(row_tile, n_classes, itemsize, vmem_cap)

    targets2d = targets.astype(jnp.int32).reshape(n_rows, 1)

    if reduction in ("mean", "sum"):
        return _multi_dsc_reduce(logits, targets2d, alpha, smooth, reduction,
                                 row_tile, num_shards, vlim)
    elif reduction == "none" or reduction is None:
        return _multi_dsc_none(logits, targets2d, alpha, smooth, row_tile, vlim)
    else:
        raise NotImplementedError(f"Reduction `{reduction}` is not supported.")


# ---------------------------------------------------------------------------
# Reference & self-test
# ---------------------------------------------------------------------------
def _reference(logits, targets, alpha=1.0, smooth=1.0, reduction="mean"):
    probs = jax.nn.softmax(logits.astype(jnp.float32), axis=1)
    p = jnp.take_along_axis(probs, targets[:, None].astype(jnp.int32), axis=1)
    pf = (1.0 - p) ** alpha * p
    loss = 1.0 - (2.0 * pf + smooth) / (pf + 1.0 + smooth)
    if reduction == "mean":
        return loss.mean()
    if reduction == "sum":
        return loss.sum()
    return loss


if __name__ == "__main__":
    key = jax.random.PRNGKey(0)
    k1, k2, k3, k4, k5, k6 = jax.random.split(key, 6)
    # slightly loose tolerance: the kernel uses the EUP approximate reciprocal
    TOL = dict(atol=2e-3, rtol=2e-3)

    # Case 1: small (N=8, C=32), all reductions.
    n, c = 8, 32
    logits = jax.random.normal(k1, (n, c), dtype=jnp.float32)
    targets = jax.random.randint(k2, (n,), 0, c, dtype=jnp.int32)
    for red in ("mean", "sum", "none"):
        got = jax.block_until_ready(multi_dsc_loss(logits, targets, reduction=red))
        want = _reference(logits, targets, reduction=red)
        assert jnp.allclose(got, want, **TOL), (red, got, want)

    # Case 2: multi-tile, ragged last tile, forced 2-way shard (phantom tile).
    n2, c2 = 300, 32
    logits2 = jax.random.normal(k3, (n2, c2), dtype=jnp.float32)
    targets2 = jax.random.randint(k4, (n2,), 0, c2, dtype=jnp.int32)
    got2 = jax.block_until_ready(
        multi_dsc_loss(logits2, targets2, reduction="mean",
                       row_tile=128, num_shards=2))
    assert jnp.allclose(got2, _reference(logits2, targets2, reduction="mean"), **TOL)
    got2n = jax.block_until_ready(
        multi_dsc_loss(logits2, targets2, reduction="none", row_tile=128))
    assert jnp.allclose(got2n, _reference(logits2, targets2, reduction="none"), **TOL)

    # Case 3: non-default alpha / smooth.
    n3, c3 = 64, 16
    logits3 = jax.random.normal(k5, (n3, c3), dtype=jnp.float32)
    targets3 = jax.random.randint(k6, (n3,), 0, c3, dtype=jnp.int32)
    got3 = jax.block_until_ready(
        multi_dsc_loss(logits3, targets3, alpha=2.0, smooth=0.5, reduction="sum"))
    want3 = _reference(logits3, targets3, alpha=2.0, smooth=0.5, reduction="sum")
    assert jnp.allclose(got3, want3, **TOL), (got3, want3)

    print("KERNEL_OK")
</pallas_src>

<mosaic_0001>
module attributes {stable_mosaic.version = 11 : i64} {
  func.func @_dsc_reduce_kernel(%arg0: i32, %arg1: i32, %arg2: memref<128x32xf32, #tpu.memory_space<vmem>>, %arg3: memref<128x1xi32, #tpu.memory_space<vmem>>, %arg4: memref<1x1x128xf32, #tpu.memory_space<vmem>>) attributes {dimension_semantics = [#tpu.dimension_semantics<parallel>, #tpu.dimension_semantics<arbitrary>], iteration_bounds = array<i64: 1, 1>, scalar_prefetch = 0 : i64, scratch_operands = 0 : i64, tpu.core_type = #tpu.core_type<tc>, window_params = [{transform_indices = @transform_0, window_bounds = array<i64: 128, 32>}, {transform_indices = @transform_1, window_bounds = array<i64: 128, 1>}, {transform_indices = @transform_2, window_bounds = array<i64: 1, 1, 128>}]} {
    %c0_i32 = arith.constant 0 : i32
    %0 = arith.cmpi eq, %arg1, %c0_i32 : i32
    %1 = arith.extui %0 : i1 to i32
    %c0_i32_0 = arith.constant 0 : i32
    %2 = arith.cmpi ne, %1, %c0_i32_0 : i32
    scf.if %2 {
      %cst = arith.constant 0.000000e+00 : f32
      %9 = vector.broadcast %cst : f32 to vector<1x1x128xf32>
      %c0 = arith.constant 0 : index
      %c0_2 = arith.constant 0 : index
      %c0_3 = arith.constant 0 : index
      %10 = vector.load %arg4[%c0, %c0_2, %c0_3] : memref<1x1x128xf32, #tpu.memory_space<vmem>>, vector<1x1x128xf32>
      tpu.vector_store %arg4[%c0, %c0_2, %c0_3], %9 {strides = array<i32>} : memref<1x1x128xf32, #tpu.memory_space<vmem>>, vector<1x1x128xf32>,
    } else {
    }
    %c1_i32 = arith.constant 1 : i32
    %3 = arith.muli %arg0, %c1_i32 : i32
    %4 = arith.addi %3, %arg1 : i32
    %c128_i32 = arith.constant 128 : i32
    %5 = arith.muli %4, %c128_i32 : i32
    %c8_i32 = arith.constant 8 : i32
    %6 = arith.cmpi slt, %5, %c8_i32 : i32
    %7 = arith.extui %6 : i1 to i32
    %c0_i32_1 = arith.constant 0 : i32
    %8 = arith.cmpi ne, %7, %c0_i32_1 : i32
    scf.if %8 {
      %c0 = arith.constant 0 : index
      %c0_2 = arith.constant 0 : index
      %9 = vector.load %arg2[%c0, %c0_2] : memref<128x32xf32, #tpu.memory_space<vmem>>, vector<128x32xf32>
      %c0_3 = arith.constant 0 : index
      %c0_4 = arith.constant 0 : index
      %10 = vector.load %arg3[%c0_3, %c0_4] : memref<128x1xi32, #tpu.memory_space<vmem>>, vector<128x1xi32>
      %11 = tpu.iota {dimensions = array<i32: 1>} : vector<128x32xi32>
      %12 = vector.broadcast %10 : vector<128x1xi32> to vector<128x32xi32>
      %13 = arith.cmpi eq, %11, %12 : vector<128x32xi32>
      %cst = arith.constant dense<0xFF800000> : vector<128xf32>
      %14 = vector.multi_reduction <maximumf>, %9, %cst [1] : vector<128x32xf32> to vector<128xf32>
      %15 = vector.shape_cast %14 : vector<128xf32> to vector<128x1xf32>
      %16 = vector.broadcast %15 : vector<128x1xf32> to vector<128x32xf32>
      %17 = arith.subf %9, %16 : vector<128x32xf32>
      %18 = math.exp %17 : vector<128x32xf32>
      %cst_5 = arith.constant dense<0.000000e+00> : vector<128xf32>
      %19 = vector.multi_reduction <add>, %18, %cst_5 [1] : vector<128x32xf32> to vector<128xf32>
      %20 = vector.shape_cast %19 : vector<128xf32> to vector<128x1xf32>
      %cst_6 = arith.constant 0.000000e+00 : f32
      %21 = vector.broadcast %cst_6 : f32 to vector<128x32xf32>
      %22 = arith.select %13, %18, %21 : vector<128x32xi1>, vector<128x32xf32>
      %cst_7 = arith.constant dense<0.000000e+00> : vector<128xf32>
      %23 = vector.multi_reduction <add>, %22, %cst_7 [1] : vector<128x32xf32> to vector<128xf32>
      %24 = vector.shape_cast %23 : vector<128xf32> to vector<128x1xf32>
      %25 = tpu.reciprocal %20 {approx = true} : vector<128x1xf32> -> vector<128x1xf32>
      %26 = arith.mulf %24, %25 : vector<128x1xf32>
      %27 = vector.shape_cast %26 : vector<128x1xf32> to vector<1x128xf32>
      %cst_8 = arith.constant 1.000000e+00 : f32
      %28 = vector.broadcast %cst_8 : f32 to vector<1x128xf32>
      %29 = arith.subf %28, %27 : vector<1x128xf32>
      %30 = arith.mulf %29, %27 : vector<1x128xf32>
      %cst_9 = arith.constant 2.000000e+00 : f32
      %31 = vector.broadcast %cst_9 : f32 to vector<1x128xf32>
      %32 = arith.mulf %31, %30 : vector<1x128xf32>
      %cst_10 = arith.constant 1.000000e+00 : f32
      %33 = vector.broadcast %cst_10 : f32 to vector<1x128xf32>
      %34 = arith.addf %32, %33 : vector<1x128xf32>
      %cst_11 = arith.constant 1.000000e+00 : f32
      %35 = vector.broadcast %cst_11 : f32 to vector<1x128xf32>
      %36 = arith.addf %30, %35 : vector<1x128xf32>
      %cst_12 = arith.constant 1.000000e+00 : f32
      %37 = vector.broadcast %cst_12 : f32 to vector<1x128xf32>
      %38 = arith.addf %36, %37 : vector<1x128xf32>
      %39 = arith.divf %34, %38 : vector<1x128xf32>
      %cst_13 = arith.constant 1.000000e+00 : f32
      %40 = vector.broadcast %cst_13 : f32 to vector<1x128xf32>
      %41 = arith.subf %40, %39 : vector<1x128xf32>
      %c128_i32_14 = arith.constant 128 : i32
      %42 = arith.addi %5, %c128_i32_14 : i32
      %c8_i32_15 = arith.constant 8 : i32
      %43 = arith.cmpi sle, %42, %c8_i32_15 : i32
      %44 = arith.extui %43 : i1 to i32
      %c0_i32_16 = arith.constant 0 : i32
      %45 = arith.cmpi ne, %44, %c0_i32_16 : i32
      scf.if %45 {
        %c0_20 = arith.constant 0 : index
        %c0_21 = arith.constant 0 : index
        %c0_22 = arith.constant 0 : index
        %50 = vector.load %arg4[%c0_20, %c0_21, %c0_22] : memref<1x1x128xf32, #tpu.memory_space<vmem>>, vector<1x1x128xf32>
        %51 = vector.shape_cast %41 : vector<1x128xf32> to vector<1x1x128xf32>
        %52 = arith.addf %50, %51 : vector<1x1x128xf32>
        %c0_23 = arith.constant 0 : index
        %c0_24 = arith.constant 0 : index
        %c0_25 = arith.constant 0 : index
        %53 = vector.load %arg4[%c0_23, %c0_24, %c0_25] : memref<1x1x128xf32, #tpu.memory_space<vmem>>, vector<1x1x128xf32>
        tpu.vector_store %arg4[%c0_23, %c0_24, %c0_25], %52 {strides = array<i32>} : memref<1x1x128xf32, #tpu.memory_space<vmem>>, vector<1x1x128xf32>,
      } else {
      }
      %c128_i32_17 = arith.constant 128 : i32
      %46 = arith.addi %5, %c128_i32_17 : i32
      %c8_i32_18 = arith.constant 8 : i32
      %47 = arith.cmpi sgt, %46, %c8_i32_18 : i32
      %48 = arith.extui %47 : i1 to i32
      %c0_i32_19 = arith.constant 0 : i32
      %49 = arith.cmpi ne, %48, %c0_i32_19 : i32
      scf.if %49 {
        %50 = tpu.iota {dimensions = array<i32: 1>} : vector<1x128xi32>
        %c0_20 = arith.constant 0 : index
        %c0_21 = arith.constant 0 : index
        %c0_22 = arith.constant 0 : index
        %51 = vector.load %arg4[%c0_20, %c0_21, %c0_22] : memref<1x1x128xf32, #tpu.memory_space<vmem>>, vector<1x1x128xf32>
        %52 = vector.broadcast %5 : i32 to vector<1x128xi32>
        %53 = arith.addi %52, %50 : vector<1x128xi32>
        %c8_i32_23 = arith.constant 8 : i32
        %54 = vector.broadcast %c8_i32_23 : i32 to vector<1x128xi32>
        %55 = arith.cmpi slt, %53, %54 : vector<1x128xi32>
        %cst_24 = arith.constant 0.000000e+00 : f32
        %56 = vector.broadcast %cst_24 : f32 to vector<1x128xf32>
        %57 = arith.select %55, %41, %56 : vector<1x128xi1>, vector<1x128xf32>
        %58 = vector.shape_cast %57 : vector<1x128xf32> to vector<1x1x128xf32>
        %59 = arith.addf %51, %58 : vector<1x1x128xf32>
        %c0_25 = arith.constant 0 : index
        %c0_26 = arith.constant 0 : index
        %c0_27 = arith.constant 0 : index
        %60 = vector.load %arg4[%c0_25, %c0_26, %c0_27] : memref<1x1x128xf32, #tpu.memory_space<vmem>>, vector<1x1x128xf32>
        tpu.vector_store %arg4[%c0_25, %c0_26, %c0_27], %59 {strides = array<i32>} : memref<1x1x128xf32, #tpu.memory_space<vmem>>, vector<1x1x128xf32>,
      } else {
      }
    } else {
    }
    return
  }
  func.func @transform_0(%arg0: i32, %arg1: i32) -> (i32, i32) {
    %c1_i32 = arith.constant 1 : i32
    %0 = arith.muli %arg0, %c1_i32 : i32
    %1 = arith.addi %0, %arg1 : i32
    %c0_i32 = arith.constant 0 : i32
    %2 = arith.minsi %1, %c0_i32 : i32
    %c0_i32_0 = arith.constant 0 : i32
    %c0_i32_1 = arith.constant 0 : i32
    return %2, %c0_i32_0 : i32, i32
  }
  func.func @transform_1(%arg0: i32, %arg1: i32) -> (i32, i32) {
    %c1_i32 = arith.constant 1 : i32
    %0 = arith.muli %arg0, %c1_i32 : i32
    %1 = arith.addi %0, %arg1 : i32
    %c0_i32 = arith.constant 0 : i32
    %2 = arith.minsi %1, %c0_i32 : i32
    %c0_i32_0 = arith.constant 0 : i32
    %c0_i32_1 = arith.constant 0 : i32
    return %2, %c0_i32_0 : i32, i32
  }
  func.func @transform_2(%arg0: i32, %arg1: i32) -> (i32, i32, i32) {
    %c0_i32 = arith.constant 0 : i32
    %c0_i32_0 = arith.constant 0 : i32
    %c0_i32_1 = arith.constant 0 : i32
    return %arg0, %c0_i32, %c0_i32_0 : i32, i32, i32
  }
}

</mosaic_0001>

<bundles_post_ra>
// kernel: tpu_custom_call.1
= control target key start
LH: loop header
LB: loop body
LE: loop exit
PB: predicated region body
PF: predicated region fallthrough
CT: control target
= control target key end

     0   :  { %vm205_vm0 = vcmask 261120   ;;  %v2370_v6 = vmov 0   ;;  %s2843_s0 = inlined_call_operand.vmem [shape: f32[8,32], index: 0, kind: input, shape index: {}]   ;;  %s2844_s1 = inlined_call_operand.vmem [shape: s32[8,1], index: 1, kind: input, shape index: {}]   ;;  %s2845_s2 = inlined_call_operand.hbm [shape: f32[1,1,128], index: 2, kind: output, shape index: {}]  }
   0x1   :  { %v2391_v0 = vld [vmem:[%s2843_s0 + $0x10] sm:$0xff]  ;;  %v2396_v1 = vld [vmem:[%s2843_s0] sm:$0xff]  ;;  %v2401_v2 = vld [vmem:[%s2843_s0 + $0x18] sm:$0xff]  ;;  %2249 = vset.pattern.permute.xlu1 %v2370_v6  ;;  %2248 = vset.pattern.permute.xlu0 %v2370_v6 }
   0x2   :  { %v212_v3 = vsel %vm205_vm0, %v2391_v0, -inf  ;;  %v206_v4 = vsel %vm205_vm0, %v2396_v1, -inf  ;;  %v2410_v5 = vld [vmem:[%s2843_s0 + $0x8] sm:$0xff]  ;;  %v215_v7 = vsel %vm205_vm0, %v2401_v2, -inf  ;;  %v2424_v10 = vld [vmem:[%s2843_s0 + $0x20] sm:$0xff]  ;;  %v2433_v13 = vld [vmem:[%s2843_s0 + $0x38] sm:$0xff] }
   0x3   :  { %213 = vmax.xlane.f32.xlu1 %v212_v3  ;;  %207 = vmax.xlane.f32.xlu0 %v206_v4  ;;  %v209_v8 = vsel %vm205_vm0, %v2410_v5, -inf  ;;  %v2419_v9 = vld [vmem:[%s2843_s0 + $0x28] sm:$0xff]  ;;  %v218_v12 = vsel %vm205_vm0, %v2424_v10, -inf  ;;  %v2438_v14 = vld [vmem:[%s2843_s0 + $0x30] sm:$0xff] }
   0x4   :  { %v221_v11 = vsel %vm205_vm0, %v2419_v9, -inf }
   0x7   :  { %216 = vmax.xlane.f32.xlu1 %v215_v7  ;;  %210 = vmax.xlane.f32.xlu0 %v209_v8 }
   0xb   :  { %222 = vmax.xlane.f32.xlu1 %v221_v11  ;;  %219 = vmax.xlane.f32.xlu0 %v218_v12 }
   0xc   :  { %7 = vsyncpa [#allocation3], 0  ;;  %v227_v15 = vsel %vm205_vm0, %v2433_v13, -inf  ;;  %v224_v16 = vsel %vm205_vm0, %v2438_v14, -inf  ;;  %v2447_v17 = vld [vmem:[%s2843_s0 + $0x48] sm:$0xff]  ;;  %v2452_v18 = vld [vmem:[%s2843_s0 + $0x40] sm:$0xff] }
   0xd   :  { %v233_v19 = vsel %vm205_vm0, %v2447_v17, -inf  ;;  %v230_v20 = vsel %vm205_vm0, %v2452_v18, -inf  ;;  %v2461_v21 = vld [vmem:[%s2843_s0 + $0x58] sm:$0xff]  ;;  %v2466_v22 = vld [vmem:[%s2843_s0 + $0x50] sm:$0xff]  ;;  %v2475_v25 = vld [vmem:[%s2843_s0 + $0x68] sm:$0xff] }
   0xe   :  { %v239_v23 = vsel %vm205_vm0, %v2461_v21, -inf  ;;  %v236_v24 = vsel %vm205_vm0, %v2466_v22, -inf  ;;  %v2480_v26 = vld [vmem:[%s2843_s0 + $0x60] sm:$0xff]  ;;  %v245_v27 = vsel %vm205_vm0, %v2475_v25, -inf  ;;  %v2489_v29 = vld [vmem:[%s2843_s0 + $0x78] sm:$0xff]  ;;  %v2494_v30 = vld [vmem:[%s2843_s0 + $0x70] sm:$0xff] }
   0xf   :  { %228 = vmax.xlane.f32.xlu1 %v227_v15  ;;  %225 = vmax.xlane.f32.xlu0 %v224_v16  ;;  %v242_v28 = vsel %vm205_vm0, %v2480_v26, -inf  ;;  %v251_v31 = vsel %vm205_vm0, %v2489_v29, -inf  ;;  %v248_v32 = vsel %vm205_vm0, %v2494_v30, -inf  ;;  %v124_v33 = vld [vmem:[%s2844_s1 + $0x8] sm:$0xff]  ;;  %v125_v34 = vld [vmem:[%s2844_s1 + $0x10] sm:$0xff]  ;;  %v123_v35 = vld [vmem:[%s2844_s1] sm:$0xff] }
  0x10   :  { %v126_v36 = vld [vmem:[%s2844_s1 + $0x18] sm:$0xff]  ;;  %v132_v37 = vld [vmem:[%s2844_s1 + $0x48] sm:$0xff]  ;;  %v127_v38 = vld [vmem:[%s2844_s1 + $0x20] sm:$0xff] }
  0x11   :  { %v134_v39 = vld [vmem:[%s2844_s1 + $0x58] sm:$0xff]  ;;  %v128_v40 = vld [vmem:[%s2844_s1 + $0x28] sm:$0xff]  ;;  %v129_v42 = vld [vmem:[%s2844_s1 + $0x30] sm:$0xff] }
  0x12   :  { %v136_v41 = vld [vmem:[%s2844_s1 + $0x68] sm:$0xff]  ;;  %v138_v43 = vld [vmem:[%s2844_s1 + $0x78] sm:$0xff]  ;;  %v131_v45 = vld [vmem:[%s2844_s1 + $0x40] sm:$0xff] }
  0x13   :  { %234 = vmax.xlane.f32.xlu1 %v233_v19  ;;  %231 = vmax.xlane.f32.xlu0 %v230_v20  ;;  %v130_v44 = vld [vmem:[%s2844_s1 + $0x38] sm:$0xff]  ;;  %v133_v46 = vld [vmem:[%s2844_s1 + $0x50] sm:$0xff]  ;;  %v135_v47 = vld [vmem:[%s2844_s1 + $0x60] sm:$0xff] }
  0x14   :  { %v137_v48 = vld [vmem:[%s2844_s1 + $0x70] sm:$0xff]  ;;  %s2372_s1 = smov [#allocation2]  }
  0x15   :  { %s2225_s16 = sshll.u32 %s2372_s1, 4  ;;  %s2226_s16 = int_to_ptr.vmem [resolvable:$true] %s2225_s16 }
  0x16   :  { %s2346_s0 = scalar_lea.vmem %s2226_s16, 16  ;;  %s2350_s17 = scalar_lea.vmem %s2226_s16, 32 }
  0x17   :  { %240 = vmax.xlane.f32.xlu1 %v239_v23  ;;  %237 = vmax.xlane.f32.xlu0 %v236_v24  ;;  %p2347_p0 = scmp.ne.s32.totalorder %s2226_s16, %s2346_s0  ;;  %p2351_p1 = scmp.lt.s32.totalorder %s2226_s16, %s2226_s16 }
  0x18   :  { %p2352_p2 = scmp.lt.s32.totalorder %s2350_s17, %s2346_s0 }
  0x1a   :  { %p2353_p3 = por %p2352_p2, %p2351_p1 }
  0x1b   :  { %246 = vmax.xlane.f32.xlu1 %v245_v27  ;;  %243 = vmax.xlane.f32.xlu0 %v242_v28 }
  0x1c   :  { %p2354_p4 = pnand %p2353_p3, %p2347_p0 }
  0x1f   :  { %252 = vmax.xlane.f32.xlu1 %v251_v31  ;;  %249 = vmax.xlane.f32.xlu0 %v248_v32 }
  0x30   :  { %145 = vperm.xlu1 %2249, %v124_v33  }
  0x34   :  { %148 = vperm.xlu1 %2249, %v125_v34  }
  0x35   :  { %142 = vperm.xlu0 %2248, %v123_v35  }
  0x38   :  { %151 = vperm.xlu1 %2249, %v126_v36  }
  0x39   :  { %169 = vperm.xlu0 %2248, %v132_v37  }
  0x3c   :  { %154 = vperm.xlu1 %2249, %v127_v38  }
  0x3d   :  { %175 = vperm.xlu0 %2248, %v134_v39  }
  0x40   :  { %157 = vperm.xlu1 %2249, %v128_v40  }
  0x41   :  { %181 = vperm.xlu0 %2248, %v136_v41  }
  0x44   :  { %160 = vperm.xlu1 %2249, %v129_v42  }
  0x45   :  { %187 = vperm.xlu0 %2248, %v138_v43  }
  0x48   :  { %163 = vperm.xlu1 %2249, %v130_v44  }
  0x4c   :  { %166 = vperm.xlu1 %2249, %v131_v45  }
  0x50   :  { %172 = vperm.xlu1 %2249, %v133_v46  }
  0x54   :  { %178 = vperm.xlu1 %2249, %v135_v47  }
  0x58   :  { %184 = vperm.xlu1 %2249, %v137_v48  }
  0x90   :  { %v214_v49 = vpop.xlane.xlu1 %213  ;;  %v208_v50 = vpop.xlane.xlu0 %207 }
  0x91   :  { %v254_v51 = vsub.f32 %v2396_v1, %v208_v50  ;;  %v256_v53 = vsub.f32 %v2391_v0, %v214_v49 }
  0x93   :  { %v270_v52 = vmul.f32 1.442695, %v254_v51  ;;  %v274_v60 = vmul.f32 1.442695, %v256_v53 }
  0x94   :  { %v217_v54 = vpop.xlane.xlu1 %216  ;;  %v211_v55 = vpop.xlane.xlu0 %210 }
  0x95   :  { %v257_v56 = vsub.f32 %v2401_v2, %v217_v54  ;;  %v255_v57 = vsub.f32 %v2410_v5, %v211_v55  ;;  %2250 = vpow2.f32 %v270_v52 }
  0x97   :  { %v276_v58 = vmul.f32 1.442695, %v257_v56  ;;  %v272_v59 = vmul.f32 1.442695, %v255_v57 }
  0x98   :  { %v223_v61 = vpop.xlane.xlu1 %222  ;;  %v220_v62 = vpop.xlane.xlu0 %219 }
  0x99   :  { %2252 = vpow2.f32 %v276_v58  ;;  %v259_v63 = vsub.f32 %v2419_v9, %v223_v61  ;;  %v258_v1 = vsub.f32 %v2424_v10, %v220_v62 }
  0x9a   :  { %2254 = vpow2.f32 %v272_v59 }
  0x9b   :  { %v280_v3 = vmul.f32 1.442695, %v259_v63  ;;  %v278_v0 = vmul.f32 1.442695, %v258_v1  ;;  %2256 = vpow2.f32 %v274_v60 }
  0x9c   :  { %v229_v4 = vpop.xlane.xlu1 %228  ;;  %v226_v6 = vpop.xlane.xlu0 %225 }
  0x9d   :  { %2258 = vpow2.f32 %v280_v3  ;;  %v261_v2 = vsub.f32 %v2433_v13, %v229_v4  ;;  %v260_v5 = vsub.f32 %v2438_v14, %v226_v6 }
  0x9e   :  { %2260 = vpow2.f32 %v278_v0 }
  0x9f   :  { %v284_v7 = vmul.f32 1.442695, %v261_v2  ;;  %v282_v8 = vmul.f32 1.442695, %v260_v5  ;;  %v2556_v11 = vpop.eup %2250 }
  0xa0   :  { %v235_v12 = vpop.xlane.xlu1 %234  ;;  %v232_v9 = vpop.xlane.xlu0 %231  ;;  %v302_v16 = vsel %vm205_vm0, %v2556_v11, 0.0 }
  0xa1   :  { %2262 = vpow2.f32 %v284_v7  ;;  %v263_v10 = vsub.f32 %v2447_v17, %v235_v12  ;;  %v262_v15 = vsub.f32 %v2452_v18, %v232_v9  ;;  %303 = vadd.xlane.f32.xlu1 %v302_v16 }
  0xa2   :  { %2264 = vpow2.f32 %v282_v8 }
  0xa3   :  { %v2562_v13 = vpop.eup %2252  ;;  %v288_v14 = vmul.f32 1.442695, %v263_v10  ;;  %v286_v19 = vmul.f32 1.442695, %v262_v15 }
  0xa4   :  { %v2564_v20 = vpop.eup %2254  ;;  %v241_v23 = vpop.xlane.xlu1 %240  ;;  %v311_v27 = vsel %vm205_vm0, %v2562_v13, 0.0 }
  0xa5   :  { %v238_v24 = vpop.xlane.xlu0 %237  ;;  %2266 = vpow2.f32 %v288_v14  ;;  %v265_v17 = vsub.f32 %v2461_v21, %v241_v23  ;;  %v305_v28 = vsel %vm205_vm0, %v2564_v20, 0.0  ;;  %v2572_v31 = vpop.eup %2256  ;;  %312 = vadd.xlane.f32.xlu1 %v311_v27 }
  0xa6   :  { %v264_v18 = vsub.f32 %v2466_v22, %v238_v24  ;;  %2268 = vpow2.f32 %v286_v19  ;;  %306 = vadd.xlane.f32.xlu0 %v305_v28  ;;  %v308_v39 = vsel %vm205_vm0, %v2572_v31, 0.0 }
  0xa7   :  { %v2574_v32 = vpop.eup %2258  ;;  %v292_v33 = vmul.f32 1.442695, %v265_v17 }
  0xa8   :  { %v290_v34 = vmul.f32 1.442695, %v264_v18  ;;  %v2576_v35 = vpop.eup %2260  ;;  %v247_v36 = vpop.xlane.xlu1 %246  ;;  %v317_v21 = vsel %vm205_vm0, %v2574_v32, 0.0 }
  0xa9   :  { %v244_v37 = vpop.xlane.xlu0 %243  ;;  %2270 = vpow2.f32 %v292_v33  ;;  %v267_v22 = vsub.f32 %v2475_v25, %v247_v36  ;;  %318 = vadd.xlane.f32.xlu1 %v317_v21  ;;  %v314_v43 = vsel %vm205_vm0, %v2576_v35, 0.0 }
  0xaa   :  { %v266_v38 = vsub.f32 %v2480_v26, %v244_v37  ;;  %2272 = vpow2.f32 %v290_v34  ;;  %309 = vadd.xlane.f32.xlu0 %v308_v39 }
  0xab   :  { %v2584_v40 = vpop.eup %2262  ;;  %v296_v41 = vmul.f32 1.442695, %v267_v22 }
  0xac   :  { %v294_v42 = vmul.f32 1.442695, %v266_v38  ;;  %v2588_v44 = vpop.eup %2264  ;;  %v253_v45 = vpop.xlane.xlu1 %252  ;;  %v323_v25 = vsel %vm205_vm0, %v2584_v40, 0.0 }
  0xad   :  { %v250_v46 = vpop.xlane.xlu0 %249  ;;  %2274 = vpow2.f32 %v296_v41  ;;  %v269_v26 = vsub.f32 %v2489_v29, %v253_v45  ;;  %324 = vadd.xlane.f32.xlu1 %v323_v25  ;;  %v320_v51 = vsel %vm205_vm0, %v2588_v44, 0.0 }
  0xae   :  { %v268_v47 = vsub.f32 %v2494_v30, %v250_v46  ;;  %2276 = vpow2.f32 %v294_v42  ;;  %315 = vadd.xlane.f32.xlu0 %v314_v43  ;;  %v139_v30 = vlaneseq }
  0xaf   :  { %v2594_v48 = vpop.eup %2266  ;;  %v300_v49 = vmul.f32 1.442695, %v269_v26 }
  0xb0   :  { %v298_v50 = vmul.f32 1.442695, %v268_v47  ;;  %v2598_v52 = vpop.eup %2268  ;;  %v146_v53 = vpop.permute.xlu1 %145  ;;  %v329_v54 = vsel %vm205_vm0, %v2594_v48, 0.0  ;;  %v2613_v60 = vand.u32 127, %v139_v30 }
  0xb1   :  { %2278 = vpow2.f32 %v300_v49  ;;  %330 = vadd.xlane.f32.xlu1 %v329_v54  ;;  %v326_v55 = vsel %vm205_vm0, %v2598_v52, 0.0 }
  0xb2   :  { %2280 = vpow2.f32 %v298_v50  ;;  %321 = vadd.xlane.f32.xlu0 %v320_v51  ;;  %vm190_vm1 = vcmp.eq.s32.totalorder %v2613_v60, %v146_v53  ;;  %v2371_v53 = vmov 0.0  }
  0xb3   :  { %v2602_v29 = vpop.eup %2270  ;;  %v351_v7 = vsel %vm190_vm1, %v2564_v20, 0.0  ;;  %100 = vst [vmem:[#allocation2] sm:$0x1] %v2371_v53 }
  0xb4   :  { %v2606_v56 = vpop.eup %2272  ;;  %v149_v57 = vpop.permute.xlu1 %148  ;;  %v335_v58 = vsel %vm205_vm0, %v2602_v29, 0.0  ;;  %v369_v9 = vsel %vm205_vm0, %v351_v7, 0.0 }
  0xb5   :  { %336 = vadd.xlane.f32.xlu1 %v335_v58  ;;  %v332_v61 = vsel %vm205_vm0, %v2606_v56, 0.0  ;;  %v143_v6 = vpop.permute.xlu0 %142  ;;  %vm191_vm2 = vcmp.eq.s32.totalorder %v2613_v60, %v149_v57 }
  0xb6   :  { %327 = vadd.xlane.f32.xlu0 %v326_v55  ;;  %vm189_vm3 = vcmp.eq.s32.totalorder %v2613_v60, %v143_v6  ;;  %v352_v15 = vsel %vm191_vm2, %v2572_v31, 0.0  ;;  %vm2122_vm2 = vcmask 195712  }
  0xb7   :  { %v2610_v59 = vpop.eup %2274  ;;  %v350_v16 = vsel %vm189_vm3, %v2556_v11, 0.0  ;;  %v372_v19 = vsel %vm205_vm0, %v352_v15, 0.0  ;;  %vm2129_vm3 = vcmask 261312  }
  0xb8   :  { %v2617_v62 = vpop.eup %2276  ;;  %v152_v63 = vpop.permute.xlu1 %151  ;;  %v341_v1 = vsel %vm205_vm0, %v2610_v59, 0.0  ;;  %v366_v20 = vsel %vm205_vm0, %v350_v16, 0.0 }
  0xb9   :  { %342 = vadd.xlane.f32.xlu1 %v341_v1  ;;  %v338_v0 = vsel %vm205_vm0, %v2617_v62, 0.0  ;;  %v170_v10 = vpop.permute.xlu0 %169  ;;  %vm192_vm4 = vcmp.eq.s32.totalorder %v2613_v60, %v152_v63 }
  0xba   :  { %333 = vadd.xlane.f32.xlu0 %v332_v61  ;;  %v353_v23 = vsel %vm192_vm4, %v2562_v13, 0.0  ;;  %vm198_vm8 = vcmp.eq.s32.totalorder %v2613_v60, %v170_v10  ;;  %vm2136_vm4 = vcmask 326912  }
  0xbb   :  { %v2621_v3 = vpop.eup %2278  ;;  %v375_v11 = vsel %vm205_vm0, %v353_v23, 0.0  ;;  %v359_v37 = vsel %vm198_vm8, %v2594_v48, 0.0  ;;  %vm2164_vm8 = vcmask 589312  }
  0xbc   :  { %v2626_v4 = vpop.eup %2280  ;;  %v155_v2 = vpop.permute.xlu1 %154  ;;  %v347_v8 = vsel %vm205_vm0, %v2621_v3, 0.0  ;;  %v393_v22 = vsel %vm205_vm0, %v359_v37, 0.0 }
  0xbd   :  { %v344_v5 = vsel %vm205_vm0, %v2626_v4, 0.0  ;;  %vm193_vm6 = vcmp.eq.s32.totalorder %v2613_v60, %v155_v2  ;;  %v176_v27 = vpop.permute.xlu0 %175 }
  0xbe   :  { %339 = vadd.xlane.f32.xlu0 %v338_v0  ;;  %345 = vadd.xlane.f32.xlu1 %v344_v5  ;;  %v354_v28 = vsel %vm193_vm6, %v2576_v35, 0.0  ;;  %vm200_vm10 = vcmp.eq.s32.totalorder %v2613_v60, %v176_v27  ;;  %vm2150_vm6 = vcmask 458112  }
  0xbf   :  { %v378_v33 = vsel %vm205_vm0, %v354_v28, 0.0  ;;  %v361_v39 = vsel %vm200_vm10, %v2602_v29, 0.0  ;;  %vm2178_vm10 = vcmask 720512  }
  0xc0   :  { %v158_v12 = vpop.permute.xlu1 %157  ;;  %v399_v43 = vsel %vm205_vm0, %v361_v39, 0.0 }
  0xc1   :  { %vm194_vm5 = vcmp.eq.s32.totalorder %v2613_v60, %v158_v12  ;;  %v182_v34 = vpop.permute.xlu0 %181 }
  0xc2   :  { %370 = vadd.xlane.f32.xlu0 %v369_v9  ;;  %348 = vadd.xlane.f32.xlu1 %v347_v8  ;;  %v355_v24 = vsel %vm194_vm5, %v2574_v32, 0.0  ;;  %vm202_vm12 = vcmp.eq.s32.totalorder %v2613_v60, %v182_v34  ;;  %vm2143_vm5 = vcmask 392512  }
  0xc3   :  { %v381_v18 = vsel %vm205_vm0, %v355_v24, 0.0  ;;  %v363_v45 = vsel %vm202_vm12, %v2610_v59, 0.0  ;;  %vm2192_vm12 = vcmask 851712  }
  0xc4   :  { %v161_v14 = vpop.permute.xlu1 %160  ;;  %v405_v26 = vsel %vm205_vm0, %v363_v45, 0.0 }
  0xc5   :  { %vm195_vm9 = vcmp.eq.s32.totalorder %v2613_v60, %v161_v14 }
  0xc6   :  { %373 = vadd.xlane.f32.xlu0 %v372_v19  ;;  %367 = vadd.xlane.f32.xlu1 %v366_v20  ;;  %v356_v36 = vsel %vm195_vm9, %v2588_v44, 0.0  ;;  %vm2171_vm9 = vcmask 654912  }
  0xc7   :  { %v384_v21 = vsel %vm205_vm0, %v356_v36, 0.0 }
  0xc8   :  { %v164_v17 = vpop.permute.xlu1 %163 }
  0xc9   :  { %vm196_vm7 = vcmp.eq.s32.totalorder %v2613_v60, %v164_v17 }
  0xca   :  { %376 = vadd.xlane.f32.xlu0 %v375_v11  ;;  %382 = vadd.xlane.f32.xlu1 %v381_v18  ;;  %v357_v31 = vsel %vm196_vm7, %v2584_v40, 0.0  ;;  %v188_v40 = vpop.permute.xlu0 %187  ;;  %vm2157_vm7 = vcmask 523712  }
  0xcb   :  { %v387_v13 = vsel %vm205_vm0, %v357_v31, 0.0  ;;  %vm204_vm14 = vcmp.eq.s32.totalorder %v2613_v60, %v188_v40 }
  0xcc   :  { %v167_v32 = vpop.permute.xlu1 %166  ;;  %v365_v48 = vsel %vm204_vm14, %v2621_v3, 0.0  ;;  %vm2206_vm14 = vcmask 982912  }
  0xcd   :  { %vm197_vm11 = vcmp.eq.s32.totalorder %v2613_v60, %v167_v32  ;;  %v411_v50 = vsel %vm205_vm0, %v365_v48, 0.0  ;;  %v2691_v32 = vadd.s32 4294967288, %v2613_v60 }
  0xce   :  { %379 = vadd.xlane.f32.xlu0 %v378_v33  ;;  %388 = vadd.xlane.f32.xlu1 %v387_v13  ;;  %v358_v38 = vsel %vm197_vm11, %v2598_v52, 0.0  ;;  %v2688_v13 = vshrl.u32 %v139_v30, 7  ;;  %v2694_v33 = vadd.s32 4294967280, %v2613_v60  ;;  %vm2185_vm11 = vcmask 786112  }
  0xcf   :  { %v390_v42 = vsel %vm205_vm0, %v358_v38, 0.0 }
  0xd0   :  { %v173_v35 = vpop.permute.xlu1 %172  ;;  %v2113_v45 = vsub.s32 %v2691_v32, %v2688_v13 }
  0xd1   :  { %vm199_vm13 = vcmp.eq.s32.totalorder %v2613_v60, %v173_v35 }
  0xd2   :  { %385 = vadd.xlane.f32.xlu0 %v384_v21  ;;  %394 = vadd.xlane.f32.xlu1 %v393_v22  ;;  %v360_v44 = vsel %vm199_vm13, %v2606_v56, 0.0  ;;  %vm2199_vm13 = vcmask 917312  }
  0xd3   :  { %v396_v25 = vsel %vm205_vm0, %v360_v44, 0.0 }
  0xd4   :  { %v179_v41 = vpop.permute.xlu1 %178 }
  0xd5   :  { %vm201_vm15 = vcmp.eq.s32.totalorder %v2613_v60, %v179_v41  ;;  %v2700_v41 = vadd.s32 4294967256, %v2613_v60 }
  0xd6   :  { %391 = vadd.xlane.f32.xlu0 %v390_v42  ;;  %400 = vadd.xlane.f32.xlu1 %v399_v43  ;;  %v362_v47 = vsel %vm201_vm15, %v2617_v62, 0.0  ;;  %v2703_v42 = vadd.s32 4294967272, %v2613_v60  ;;  %vm2213_vm15 = vcmask 1048512  }
  0xd7   :  { %v402_v49 = vsel %vm205_vm0, %v362_v47, 0.0 }
  0xd8   :  { %v185_v46 = vpop.permute.xlu1 %184 }
  0xd9   :  { %vm203_vm1 = vcmp.eq.s32.totalorder %v2613_v60, %v185_v46  ;;  %v2108_v46 = vsub.s32 %v2613_v60, %v2688_v13 }
  0xda   :  { %397 = vadd.xlane.f32.xlu0 %v396_v25  ;;  %406 = vadd.xlane.f32.xlu1 %v405_v26  ;;  %v364_v51 = vsel %vm203_vm1, %v2626_v4, 0.0  ;;  %v2120_v25 = vsub.s32 %v2694_v33, %v2688_v13  ;;  %vm2089_vm1 = vcmp.lt.s32.totalorder %v2613_v60, 8 }
  0xdb   :  { %v408_v52 = vsel %vm205_vm0, %v364_v51, 0.0  ;;  %vm2115_vm0 = vcmask 130112  }
  0xde   :  { %403 = vadd.xlane.f32.xlu0 %v402_v49  ;;  %412 = vadd.xlane.f32.xlu1 %v411_v50  ;;  %v2715_v49 = vadd.s32 4294967240, %v2613_v60 }
  0xe2   :  { %409 = vadd.xlane.f32.xlu0 %v408_v52 }
 0x12e   :  { %v304_v54 = vpop.xlane.xlu1 %303 }
 0x132   :  { %v313_v29 = vpop.xlane.xlu1 %312 }
 0x133   :  { %v307_v55 = vpop.xlane.xlu0 %306 }
 0x134   :  { %2282 = vrcp.f32 %v307_v55 }
 0x135   :  { %2284 = vrcp.f32 %v304_v54 }
 0x136   :  { %v319_v56 = vpop.xlane.xlu1 %318 }
 0x137   :  { %v310_v57 = vpop.xlane.xlu0 %309 }
 0x138   :  { %2286 = vrcp.f32 %v310_v57  ;;  %v2127_v57 = vsub.s32 %v2703_v42, %v2688_v13 }
 0x139   :  { %2288 = vrcp.f32 %v313_v29 }
 0x13a   :  { %v325_v58 = vpop.xlane.xlu1 %324  ;;  %2290 = vrcp.f32 %v319_v56  ;;  %v2141_v56 = vsub.s32 %v2700_v41, %v2688_v13 }
 0x13b   :  { %v316_v59 = vpop.xlane.xlu0 %315  ;;  %2292 = vrcp.f32 %v325_v58 }
 0x13c   :  { %2294 = vrcp.f32 %v316_v59 }
 0x13e   :  { %v331_v61 = vpop.xlane.xlu1 %330  ;;  %v2283_v2 = vpop.eup %2282 }
 0x13f   :  { %v322_v62 = vpop.xlane.xlu0 %321  ;;  %v2285_v12 = vpop.eup %2284 }
 0x140   :  { %2296 = vrcp.f32 %v322_v62  ;;  %v2724_v62 = vadd.s32 4294967264, %v2613_v60 }
 0x141   :  { %2298 = vrcp.f32 %v331_v61 }
 0x142   :  { %v337_v63 = vpop.xlane.xlu1 %336  ;;  %v2287_v9 = vpop.eup %2286 }
 0x143   :  { %v328_v1 = vpop.xlane.xlu0 %327  ;;  %v2289_v17 = vpop.eup %2288 }
 0x144   :  { %v2291_v31 = vpop.eup %2290  ;;  %2300 = vrcp.f32 %v328_v1 }
 0x145   :  { %v2293_v36 = vpop.eup %2292  ;;  %2302 = vrcp.f32 %v337_v63 }
 0x146   :  { %v343_v3 = vpop.xlane.xlu1 %342  ;;  %v2295_v39 = vpop.eup %2294 }
 0x147   :  { %v2679_v0 = vpop.xlane.xlu0 %333  ;;  %2304 = vrcp.f32 %v343_v3 }
 0x148   :  { %2306 = vrcp.f32 %v2679_v0 }
 0x14a   :  { %v2297_v52 = vpop.eup %2296 }
 0x14b   :  { %v2681_v4 = vpop.xlane.xlu1 %345  ;;  %v2683_v6 = vpop.xlane.xlu0 %339 }
 0x14c   :  { %v2299_v59 = vpop.eup %2298 }
 0x14f   :  { %v349_v5 = vpop.xlane.xlu1 %348  ;;  %v371_v7 = vpop.xlane.xlu0 %370 }
 0x150   :  { %v431_v8 = vmul.f32 %v2283_v2, %v371_v7  ;;  %2308 = vrcp.f32 %v349_v5 }
 0x152   :  { %v447_v16 = vsub.f32 1.0, %v431_v8 }
 0x153   :  { %v368_v10 = vpop.xlane.xlu1 %367  ;;  %v374_v15 = vpop.xlane.xlu0 %373 }
 0x154   :  { %v430_v14 = vmul.f32 %v2285_v12, %v368_v10  ;;  %v432_v19 = vmul.f32 %v2287_v9, %v374_v15  ;;  %v463_v11 = vmul.f32 %v447_v16, %v431_v8  ;;  %v2155_v12 = vsub.s32 %v2715_v49, %v2688_v13  ;;  %v2301_v10 = vpop.eup %2300 }
 0x155   :  { %v2731_v15 = vadd.s32 4294967224, %v2613_v60  ;;  %v2734_v16 = vadd.s32 4294967248, %v2613_v60  ;;  %v2187_v49 = vadd.s32 4294967200, %v2613_v60 }
 0x156   :  { %v446_v20 = vsub.f32 1.0, %v430_v14  ;;  %v448_v23 = vsub.f32 1.0, %v432_v19  ;;  %v511_v30 = vadd.f32 1.0, %v463_v11 }
 0x157   :  { %v383_v24 = vpop.xlane.xlu1 %382  ;;  %v377_v27 = vpop.xlane.xlu0 %376 }
 0x158   :  { %v2685_v18 = vmul.f32 %v446_v20, %v430_v14  ;;  %v433_v28 = vmul.f32 %v2289_v17, %v377_v27  ;;  %v2696_v34 = vmul.f32 %v448_v23, %v432_v19  ;;  %v435_v35 = vmul.f32 %v2291_v31, %v383_v24  ;;  %v2303_v19 = vpop.eup %2302 }
 0x159   :  { %v527_v53 = vadd.f32 1.0, %v511_v30  ;;  %v479_v20 = vmul.f32 2.0, %v463_v11  ;;  %v2134_v23 = vsub.s32 %v2724_v62, %v2688_v13  ;;  %v2148_v30 = vsub.s32 %v2734_v16, %v2688_v13 }
 0x15a   :  { %v510_v37 = vadd.f32 1.0, %v2685_v18  ;;  %v449_v21 = vsub.f32 1.0, %v433_v28  ;;  %v512_v26 = vadd.f32 1.0, %v2696_v34  ;;  %v451_v48 = vsub.f32 1.0, %v435_v35 }
 0x15b   :  { %v389_v22 = vpop.xlane.xlu1 %388  ;;  %v380_v38 = vpop.xlane.xlu0 %379  ;;  %v478_v11 = vmul.f32 2.0, %v2685_v18 }
 0x15c   :  { %v437_v40 = vmul.f32 %v2293_v36, %v389_v22  ;;  %v2705_v43 = vmul.f32 %v449_v21, %v433_v28  ;;  %v434_v44 = vmul.f32 %v2295_v39, %v380_v38  ;;  %v526_v47 = vadd.f32 1.0, %v510_v37  ;;  %v2305_v38 = vpop.eup %2304 }
 0x15d   :  { %v528_v61 = vadd.f32 1.0, %v512_v26  ;;  %v467_v1 = vmul.f32 %v451_v48, %v435_v35  ;;  %v2169_v39 = vsub.s32 %v2731_v15, %v2688_v13  ;;  %v2752_v26 = vadd.s32 4294967232, %v2613_v60 }
 0x15e   :  { %v513_v54 = vadd.f32 1.0, %v2705_v43  ;;  %v453_v29 = vsub.f32 1.0, %v437_v40  ;;  %v450_v55 = vsub.f32 1.0, %v434_v44  ;;  %2310 = vrcp.f32 %v526_v47  ;;  %v2307_v47 = vpop.eup %2306 }
 0x15f   :  { %v395_v50 = vpop.xlane.xlu1 %394  ;;  %v386_v51 = vpop.xlane.xlu0 %385  ;;  %2312 = vrcp.f32 %v527_v53  ;;  %v515_v27 = vadd.f32 1.0, %v467_v1 }
 0x160   :  { %v436_v58 = vmul.f32 %v2297_v52, %v386_v51  ;;  %v466_v63 = vmul.f32 %v450_v55, %v434_v44  ;;  %v439_v3 = vmul.f32 %v2299_v59, %v395_v50  ;;  %v529_v8 = vadd.f32 1.0, %v513_v54  ;;  %v2309_v53 = vpop.eup %2308 }
 0x161   :  { %v2728_v9 = vmul.f32 %v453_v29, %v437_v40  ;;  %2314 = vrcp.f32 %v528_v61  ;;  %v2749_v44 = vadd.s32 4294967208, %v2613_v60  ;;  %v531_v48 = vadd.f32 1.0, %v515_v27 }
 0x162   :  { %v452_v2 = vsub.f32 1.0, %v436_v58  ;;  %v514_v5 = vadd.f32 1.0, %v466_v63  ;;  %v455_v28 = vsub.f32 1.0, %v439_v3  ;;  %2316 = vrcp.f32 %v529_v8 }
 0x163   :  { %v401_v7 = vpop.xlane.xlu1 %400  ;;  %v392_v0 = vpop.xlane.xlu0 %391  ;;  %v517_v37 = vadd.f32 1.0, %v2728_v9  ;;  %v495_v54 = vadd.f32 1.0, %v479_v20  ;;  %v483_v59 = vmul.f32 2.0, %v467_v1  ;;  %v481_v61 = vmul.f32 2.0, %v2705_v43 }
 0x164   :  { %v2736_v14 = vmul.f32 %v452_v2, %v436_v58  ;;  %v438_v24 = vmul.f32 %v2301_v10, %v392_v0  ;;  %v530_v17 = vadd.f32 1.0, %v514_v5  ;;  %v441_v31 = vmul.f32 %v2303_v19, %v401_v7 }
 0x165   :  { %v2754_v50 = vmul.f32 %v455_v28, %v439_v3  ;;  %v533_v29 = vadd.f32 1.0, %v517_v37  ;;  %v494_v58 = vadd.f32 1.0, %v478_v11  ;;  %v482_v5 = vmul.f32 2.0, %v466_v63 }
 0x166   :  { %v516_v35 = vadd.f32 1.0, %v2736_v14  ;;  %v454_v21 = vsub.f32 1.0, %v438_v24  ;;  %2318 = vrcp.f32 %v530_v17  ;;  %v457_v18 = vsub.f32 1.0, %v441_v31 }
 0x167   :  { %v407_v36 = vpop.xlane.xlu1 %406  ;;  %v398_v22 = vpop.xlane.xlu0 %397  ;;  %2320 = vrcp.f32 %v2683_v6  ;;  %v480_v6 = vmul.f32 2.0, %v2696_v34  ;;  %v499_v27 = vadd.f32 1.0, %v483_v59  ;;  %v485_v17 = vmul.f32 2.0, %v2728_v9 }
 0x168   :  { %v532_v40 = vadd.f32 1.0, %v516_v35  ;;  %v2756_v51 = vmul.f32 %v454_v21, %v438_v24  ;;  %2322 = vrcp.f32 %v2681_v4  ;;  %v2311_v55 = vpop.eup %2310  ;;  %v443_v2 = vmul.f32 %v2305_v38, %v407_v36 }
 0x169   :  { %v2313_v7 = vpop.eup %2312  ;;  %v440_v0 = vmul.f32 %v2307_v47, %v398_v22  ;;  %v519_v4 = vadd.f32 1.0, %v2754_v50  ;;  %v2763_v19 = vmul.f32 %v457_v18, %v441_v31  ;;  %v543_v20 = vmul.f32 %v2311_v55, %v494_v58 }
 0x16a   :  { %2324 = vrcp.f32 %v532_v40  ;;  %v518_v3 = vadd.f32 1.0, %v2756_v51  ;;  %v496_v24 = vadd.f32 1.0, %v480_v6  ;;  %v545_v43 = vmul.f32 %v2313_v7, %v495_v54 }
 0x16b   :  { %v413_v52 = vpop.xlane.xlu1 %412  ;;  %v404_v10 = vpop.xlane.xlu0 %403  ;;  %2326 = vrcp.f32 %v531_v48  ;;  %v459_v28 = vsub.f32 1.0, %v443_v2  ;;  %v497_v37 = vadd.f32 1.0, %v481_v61  ;;  %v456_v35 = vsub.f32 1.0, %v440_v0 }
 0x16c   :  { %v445_v8 = vmul.f32 %v2309_v53, %v413_v52  ;;  %v2315_v34 = vpop.eup %2314  ;;  %2328 = vrcp.f32 %v533_v29  ;;  %v534_v1 = vadd.f32 1.0, %v518_v3  ;;  %v498_v22 = vadd.f32 1.0, %v482_v5 }
 0x16d   :  { %v2317_v36 = vpop.eup %2316  ;;  %v535_v31 = vadd.f32 1.0, %v519_v4  ;;  %v521_v38 = vadd.f32 1.0, %v2763_v19  ;;  %v2767_v11 = vmul.f32 %v459_v28, %v443_v2  ;;  %v574_v47 = vsub.f32 1.0, %v543_v20 }
 0x16e   :  { %2330 = vrcp.f32 %v534_v1  ;;  %v461_v63 = vsub.f32 1.0, %v445_v8  ;;  %v547_v48 = vmul.f32 %v2315_v34, %v496_v24  ;;  %v472_v18 = vmul.f32 %v456_v35, %v440_v0 }
 0x16f   :  { %v410_v9 = vpop.xlane.xlu0 %409  ;;  %v575_v53 = vsub.f32 1.0, %v545_v43  ;;  %v501_v54 = vadd.f32 1.0, %v485_v17  ;;  %v484_v6 = vmul.f32 2.0, %v2736_v14  ;;  %v523_v29 = vadd.f32 1.0, %v2767_v11 }
 0x170   :  { %v2319_v21 = vpop.eup %2318  ;;  %v2769_v52 = vmul.f32 %v461_v63, %v445_v8  ;;  %v549_v58 = vmul.f32 %v2317_v36, %v497_v37  ;;  %v520_v61 = vadd.f32 1.0, %v472_v18  ;;  %2332 = vrcp.f32 %v535_v31 }
 0x171   :  { %v2321_v40 = vpop.eup %2320  ;;  %v551_v59 = vmul.f32 %v2319_v21, %v498_v22  ;;  %v537_v7 = vadd.f32 1.0, %v521_v38  ;;  %v2109_v5 = vrot.slane %v574_v47, %v2108_v46  ;;  %v576_v14 = vsub.f32 1.0, %v547_v48 }
 0x172   :  { %v2323_v55 = vpop.eup %2322  ;;  %v442_v2 = vmul.f32 %v2321_v40, %v404_v10  ;;  %v525_v3 = vadd.f32 1.0, %v2769_v52  ;;  %v487_v4 = vmul.f32 2.0, %v2754_v50  ;;  %v536_v34 = vadd.f32 1.0, %v520_v61 }
 0x173   :  { %v444_v0 = vmul.f32 %v2323_v55, %v410_v9  ;;  %v2114_v10 = vrot.slane %v575_v53, %v2113_v45  ;;  %v500_v24 = vadd.f32 1.0, %v484_v6  ;;  %v486_v1 = vmul.f32 2.0, %v2756_v51 }
 0x174   :  { %v2325_v8 = vpop.eup %2324  ;;  %v539_v43 = vadd.f32 1.0, %v523_v29  ;;  %v577_v28 = vsub.f32 1.0, %v549_v58  ;;  %v578_v36 = vsub.f32 1.0, %v551_v59  ;;  %2334 = vrcp.f32 %v536_v34 }
 0x175   :  { %v2327_v20 = vpop.eup %2326  ;;  %v458_v37 = vsub.f32 1.0, %v442_v2  ;;  %v555_v46 = vmul.f32 %v2325_v8, %v500_v24  ;;  %2336 = vrcp.f32 %v537_v7  ;;  %v541_v35 = vadd.f32 1.0, %v525_v3 }
 0x176   :  { %v2329_v17 = vpop.eup %2328  ;;  %v460_v50 = vsub.f32 1.0, %v444_v0  ;;  %v2116_v21 = vsel %vm2115_vm0, %v2114_v10, %v2109_v5  ;;  %v2121_v32 = vrot.slane %v576_v14, %v2120_v25  ;;  %v553_v45 = vmul.f32 %v2327_v20, %v499_v27 }
 0x177   :  { %v474_v51 = vmul.f32 %v458_v37, %v442_v2  ;;  %v557_v22 = vmul.f32 %v2329_v17, %v501_v54  ;;  %v502_v31 = vadd.f32 1.0, %v486_v1  ;;  %2338 = vrcp.f32 %v539_v43 }
 0x178   :  { %v2331_v63 = vpop.eup %2330  ;;  %v476_v38 = vmul.f32 %v460_v50, %v444_v0  ;;  %v2128_v40 = vrot.slane %v577_v28, %v2127_v57  ;;  %v2135_v47 = vrot.slane %v578_v36, %v2134_v23  ;;  %v488_v48 = vmul.f32 2.0, %v472_v18 }
 0x179   :  { %v522_v9 = vadd.f32 1.0, %v474_v51  ;;  %v580_v53 = vsub.f32 1.0, %v555_v46  ;;  %v559_v33 = vmul.f32 %v2331_v63, %v502_v31  ;;  %2340 = vrcp.f32 %v541_v35 }
 0x17a   :  { %v524_v25 = vadd.f32 1.0, %v476_v38  ;;  %v579_v27 = vsub.f32 1.0, %v553_v45  ;;  %v2162_v54 = vsub.s32 %v2752_v26, %v2688_v13  ;;  %v2173_v6 = vadd.s32 4294967216, %v2613_v60  ;;  %v2333_v55 = vpop.eup %2332 }
 0x17b   :  { %v538_v29 = vadd.f32 1.0, %v522_v9  ;;  %v2123_v42 = vsel %vm2122_vm2, %v2121_v32, %v2116_v21  ;;  %v503_v57 = vadd.f32 1.0, %v487_v4  ;;  %v489_v62 = vmul.f32 2.0, %v2763_v19 }
 0x17c   :  { %v540_v23 = vadd.f32 1.0, %v524_v25  ;;  %v2130_v18 = vsel %vm2129_vm3, %v2128_v40, %v2123_v42  ;;  %v581_v58 = vsub.f32 1.0, %v557_v22  ;;  %v504_v59 = vadd.f32 1.0, %v488_v48 }
 0x17d   :  { %2342 = vrcp.f32 %v538_v29  ;;  %v2137_v61 = vsel %vm2136_vm4, %v2135_v47, %v2130_v18  ;;  %v2149_v26 = vrot.slane %v580_v53, %v2148_v30  ;;  %v582_v2 = vsub.f32 1.0, %v559_v33 }
 0x17e   :  { %2344 = vrcp.f32 %v540_v23  ;;  %v2335_v7 = vpop.eup %2334  ;;  %v2142_v3 = vrot.slane %v579_v27, %v2141_v56  ;;  %v561_v19 = vmul.f32 %v2333_v55, %v503_v57  ;;  %v2183_v0 = vsub.s32 %v2749_v44, %v2688_v13 }
 0x17f   :  { %v491_v8 = vmul.f32 2.0, %v2767_v11  ;;  %v2337_v5 = vpop.eup %2336  ;;  %v2176_v14 = vsub.s32 %v2173_v6, %v2688_v13  ;;  %v563_v16 = vmul.f32 %v2335_v7, %v504_v59  ;;  %v2156_v30 = vrot.slane %v581_v58, %v2155_v12  ;;  %v2086_v59 = vld [vmem:[#allocation2] sm:$0x1] }
 0x180   :  { %v2144_v4 = vsel %vm2143_vm5, %v2142_v3, %v2137_v61  ;;  %v505_v41 = vadd.f32 1.0, %v489_v62  ;;  %v493_v56 = vmul.f32 2.0, %v2769_v52  ;;  %v2163_v20 = vrot.slane %v582_v2, %v2162_v54 }
 0x181   :  { %v2339_v34 = vpop.eup %2338  ;;  %v2151_v44 = vsel %vm2150_vm6, %v2149_v26, %v2144_v4  ;;  %v584_v11 = vsub.f32 1.0, %v563_v16  ;;  %v490_v10 = vmul.f32 2.0, %v474_v51  ;;  %v583_v24 = vsub.f32 1.0, %v561_v19 }
 0x182   :  { %v565_v1 = vmul.f32 %v2337_v5, %v505_v41  ;;  %v507_v43 = vadd.f32 1.0, %v491_v8  ;;  %v492_v17 = vmul.f32 2.0, %v476_v38  ;;  %v2194_v36 = vadd.s32 4294967192, %v2613_v60 }
 0x183   :  { %v2341_v28 = vpop.eup %2340  ;;  %v2158_v12 = vsel %vm2157_vm7, %v2156_v30, %v2151_v44  ;;  %v509_v37 = vadd.f32 1.0, %v493_v56  ;;  %v2201_v46 = vadd.s32 4294967184, %v2613_v60  ;;  %v2177_v50 = vrot.slane %v584_v11, %v2176_v14 }
 0x184   :  { %v569_v52 = vmul.f32 %v2339_v34, %v507_v43  ;;  %v2165_v35 = vsel %vm2164_vm8, %v2163_v20, %v2158_v12  ;;  %v2208_v63 = vadd.s32 4294967176, %v2613_v60  ;;  %v506_v21 = vadd.f32 1.0, %v490_v10 }
 0x185   :  { %v2170_v45 = vrot.slane %v583_v24, %v2169_v39  ;;  %v585_v51 = vsub.f32 1.0, %v565_v1  ;;  %v573_v22 = vmul.f32 %v2341_v28, %v509_v37  ;;  %v508_v31 = vadd.f32 1.0, %v492_v17 }
 0x186   :  { %v2197_v40 = vsub.s32 %v2194_v36, %v2688_v13  ;;  %v2190_v47 = vsub.s32 %v2187_v49, %v2688_v13  ;;  %v587_v9 = vsub.f32 1.0, %v569_v52  ;;  %v2204_v33 = vsub.s32 %v2201_v46, %v2688_v13 }
 0x187   :  { %v2343_v32 = vpop.eup %2342  ;;  %v2172_v53 = vsel %vm2171_vm9, %v2170_v45, %v2165_v35  ;;  %v2211_v15 = vsub.s32 %v2208_v63, %v2688_v13  ;;  %v2184_v54 = vrot.slane %v585_v51, %v2183_v0  ;;  %v589_v6 = vsub.f32 1.0, %v573_v22 }
 0x188   :  { %v2345_v38 = vpop.eup %2344  ;;  %v567_v48 = vmul.f32 %v2343_v32, %v506_v21  ;;  %v2179_v27 = vsel %vm2178_vm10, %v2177_v50, %v2172_v53  ;;  %v2198_v42 = vrot.slane %v587_v9, %v2197_v40 }
 0x189   :  { %v571_v25 = vmul.f32 %v2345_v38, %v508_v31  ;;  %v2186_v62 = vsel %vm2185_vm11, %v2184_v54, %v2179_v27  ;;  %v2212_v18 = vrot.slane %v589_v6, %v2211_v15 }
 0x18a   :  { %v586_v39 = vsub.f32 1.0, %v567_v48 }
 0x18b   :  { %v588_v29 = vsub.f32 1.0, %v571_v25 }
 0x18c   :  { %v2191_v55 = vrot.slane %v586_v39, %v2190_v47 }
 0x18d   :  { %v2205_v57 = vrot.slane %v588_v29, %v2204_v33 }
 0x18e   :  { %v2193_v23 = vsel %vm2192_vm12, %v2191_v55, %v2186_v62 }
 0x18f   :  { %v2200_v58 = vsel %vm2199_vm13, %v2198_v42, %v2193_v23 }
 0x190   :  { %v2207_v13 = vsel %vm2206_vm14, %v2205_v57, %v2200_v58 }
 0x191   :  { %v2214_v61 = vsel %vm2213_vm15, %v2212_v18, %v2207_v13 }
 0x192   :  { %v2216_v26 = vsel %vm2089_vm1, %v2214_v61, 0.0 }
 0x193   :  { %v2217_v2 = vadd.f32 %v2216_v26, %v2086_v59 }
 0x195   :  { %2218 = vst [vmem:[#allocation2] sm:$0x1] %v2217_v2 }
 0x196   :  { %2357 = shalt.err (!%p2354_p4)
}
 0x197   :  { %s2358_s20 = scalar_lea.hbm %s2845_s2, 16 }
 0x198   :  { %p2359_p5 = scmp.ne.s32.totalorder %s2845_s2, %s2358_s20  ;;  %p2362_p6 = scmp.lt.u32.totalorder %s2358_s20, %s2845_s2 }
 0x19a   :  { %p2364_p7 = pnand %p2362_p6, %p2359_p5 }
 0x19c   :  { %2367 = shalt.err (!%p2364_p7)
}
 0x19d   :  { %2228 = dma.vmem_to_hbm [thread:$0]  %s2226_s16, 16, %s2845_s2, [#allocation3]  }
 0x19e   :  { %2368 = dma.done.wait [#allocation3], 16  }
 0x19f   :  { %2369 = vsyncadd [#allocation3], 4294967280 }
 0x1a0   :  { %2232 = vsyncpa [#allocation3], 1 }

</bundles_post_ra>
